<compile_context>
chip_gen: v7x
topology: tpu7x:2x2x1
jax: 0.10.0
libtpu: 0.0.40
codegen_flags: <defaults>
</compile_context>

<pallas_src>
import functools

import jax
import jax.numpy as jnp
from jax.experimental import pallas as pl
from jax.experimental.pallas import tpu as pltpu


def _feature_att_kernel(x_ref, w1_ref, b1_ref, w2_ref, b2_ref, o_ref):
    # x_ref : (C, T)      input tile, channels on sublanes, pixels on lanes
    # w1_ref: (C//2, C)   conv1 weight with BN scale folded in (activation dtype)
    # b1_ref: (C//2, 1)   folded BN bias (f32)
    # w2_ref: (C, C//2)   conv2 weight (activation dtype)
    # b2_ref: (C, 1)      conv2 bias (f32)
    x = x_ref[...]

    # conv1 (1x1, BN scale folded into the weight) + BN bias + ReLU
    h = jnp.dot(w1_ref[...], x, preferred_element_type=jnp.float32)
    h = jnp.maximum(h + b1_ref[...], 0.0)

    # conv2 (1x1, with bias)
    att = jnp.dot(w2_ref[...], h.astype(w2_ref.dtype),
                  preferred_element_type=jnp.float32) + b2_ref[...]

    # feat = sigmoid(feat_att.float()) * feat
    # sigmoid stays f32 (EUP); gate multiply runs in the activation dtype so bf16
    # inputs avoid a full-tile f32 upcast/downcast chain.
    gate = jax.nn.sigmoid(att)
    o_ref[...] = gate.astype(o_ref.dtype) * x


def _round_down_128(v):
    return (v // 128) * 128


def _vmem_capacity_bytes():
    try:
        return int(pltpu.get_tpu_info().vmem_capacity_bytes)
    except Exception:
        return 64 * 1024 * 1024  # conservative default (v7x-sized)


def _select_tile_and_vmem(HW, C, Ch, itemsize, N, tile_hw=None):
    """Pick the spatial tile (lane count) and a consistent vmem_limit_bytes.

    All arguments are Python ints (static shapes) -> runs entirely at trace time.
    """
    vmem_cap = _vmem_capacity_bytes()
    budget = int(0.65 * vmem_cap)  # leave headroom for compiler scratch

    bytes_per_lane = C * itemsize
    # weights + biases, double-buffered by the pipeline
    weight_bytes = 2 * (2 * Ch * C * itemsize + (Ch + C) * 4)
    io_budget = max(budget - weight_bytes, 4 * 128 * bytes_per_lane)
    # 4 live feature-map blocks: (input + output) x double buffering
    max_tile = max(_round_down_128(io_budget // (4 * bytes_per_lane)), 128)

    if tile_hw is not None:
        tile = max(_round_down_128(int(tile_hw)), 128)
    else:
        # Aim for multi-MiB blocks (HBM-bound kernel); 2048-lane floor amortizes the
        # ~0.35 us fixed per-grid-step overhead even at tiny C.
        target_block_bytes = min(4 * 1024 * 1024, io_budget // 4)
        tile = _round_down_128(target_block_bytes // bytes_per_lane)
        tile = max(tile, 2048)
    tile = min(tile, max_tile)

    if tile >= HW:
        tile = HW  # full-extent block is always a legal BlockSpec

    # Keep >= ~4 grid steps so multi-TensorCore chips (v7x) shard the 'parallel'
    # axes; only halve while the tile stays a lane-dense multiple of 128.
    def steps(t):
        return N * ((HW + t - 1) // t)

    while tile % 256 == 0 and tile >= 512 and steps(tile) < 4:
        tile //= 2

    block_bytes = C * tile * itemsize
    usage = 4 * block_bytes + weight_bytes + (2 << 20)  # + headroom
    vmem_limit = max(usage, 16 * 1024 * 1024)
    vmem_limit = min(vmem_limit, int(0.85 * vmem_cap))
    vmem_limit = max(vmem_limit, usage)   # never declare less than actual usage
    vmem_limit = min(vmem_limit, vmem_cap)
    return tile, int(vmem_limit)


@functools.partial(jax.jit, static_argnames=("eps", "tile_hw"))
def feature_att(feat_nchw, w1, bn_gamma, bn_beta, bn_mean, bn_var, w2, b2,
                eps=1e-5, tile_hw=None):
    """FeatureAtt forward (eval-mode BN).

    feat_nchw : (N, C, H, W)
    w1        : (C//2, C)   Conv2d(C, C//2, 1, bias=False).weight squeezed
    w2        : (C, C//2)   Conv2d(C//2, C, 1).weight squeezed
    b2        : (C,)
    """
    N, C, H, W = feat_nchw.shape
    Ch = w1.shape[0]  # C // 2
    HW = H * W
    act_dtype = feat_nchw.dtype
    itemsize = jnp.dtype(act_dtype).itemsize

    # Fold BN (eval mode) into conv1: scale into the weight, bias stays as an add.
    inv_std = 1.0 / jnp.sqrt(bn_var.astype(jnp.float32) + eps)
    s1 = bn_gamma.astype(jnp.float32) * inv_std                        # (Ch,)
    b1 = bn_beta.astype(jnp.float32) - bn_mean.astype(jnp.float32) * s1
    w1_eff = (s1[:, None] * w1.astype(jnp.float32)).astype(act_dtype)  # (Ch, C)
    w2c = w2.astype(act_dtype)                                         # (C, Ch)
    b1c = b1.reshape(Ch, 1)                                            # f32
    b2c = b2.astype(jnp.float32).reshape(C, 1)                         # f32

    # NCHW -> (N, C, H*W): free view, no data movement, no pad.
    x = feat_nchw.reshape(N, C, HW)

    tile, vmem_limit = _select_tile_and_vmem(HW, C, Ch, itemsize, N, tile_hw)
    grid = (N, (HW + tile - 1) // tile)

    weight_io_bytes = 2 * Ch * C * itemsize + (Ch + C) * 4
    cost = pl.CostEstimate(
        flops=4 * N * C * Ch * HW,
        transcendentals=N * C * HW,
        bytes_accessed=2 * N * C * HW * itemsize + weight_io_bytes,
    )

    out = pl.pallas_call(
        _feature_att_kernel,
        out_shape=jax.ShapeDtypeStruct((N, C, HW), act_dtype),
        grid_spec=pltpu.PrefetchScalarGridSpec(
            num_scalar_prefetch=0,
            grid=grid,
            in_specs=[
                pl.BlockSpec((None, C, tile), lambda n, j: (n, 0, j)),  # x tile
                pl.BlockSpec((Ch, C), lambda n, j: (0, 0)),             # w1_eff (resident)
                pl.BlockSpec((Ch, 1), lambda n, j: (0, 0)),             # folded BN bias
                pl.BlockSpec((C, Ch), lambda n, j: (0, 0)),             # w2 (resident)
                pl.BlockSpec((C, 1), lambda n, j: (0, 0)),              # conv2 bias
            ],
            out_specs=pl.BlockSpec((None, C, tile), lambda n, j: (n, 0, j)),
        ),
        compiler_params=pltpu.CompilerParams(
            dimension_semantics=("parallel", "parallel"),
            vmem_limit_bytes=vmem_limit),
        cost_estimate=cost,
    )(x, w1_eff, b1c, w2c, b2c)

    return out.reshape(N, C, H, W)


def _reference(feat, w1, bn_gamma, bn_beta, bn_mean, bn_var, w2, b2, eps=1e-5):
    # Pure-JAX reference of the same forward pass (eval-mode BN), f32 throughout.
    N, C, H, W = feat.shape
    x = feat.reshape(N, C, H * W).astype(jnp.float32)
    h = jnp.einsum("oc,ncp->nop", w1.astype(jnp.float32), x)
    h = (h - bn_mean[:, None]) / jnp.sqrt(bn_var[:, None] + eps) * bn_gamma[:, None] \
        + bn_beta[:, None]
    h = jnp.maximum(h, 0.0)
    y = jnp.einsum("oc,ncp->nop", w2.astype(jnp.float32), h) + b2[:, None]
    out = jax.nn.sigmoid(y) * x
    return out.reshape(N, C, H, W)


if __name__ == "__main__":
    key = jax.random.PRNGKey(0)
    k_feat, k_w1, k_w2, k_b2, k_g, k_b, k_m, k_v = jax.random.split(key, 8)

    N, C, H, W = 2, 16, 16, 16   # in_chan = 16 -> hidden = 8
    Ch = C // 2

    feat = jax.random.normal(k_feat, (N, C, H, W), dtype=jnp.float32)

    # Deterministic parameter init (synthetic; matches the module's shapes).
    w1 = 0.1 * jax.random.normal(k_w1, (Ch, C), dtype=jnp.float32)   # Conv2d(C, C//2, 1, bias=False)
    w2 = 0.1 * jax.random.normal(k_w2, (C, Ch), dtype=jnp.float32)   # Conv2d(C//2, C, 1)
    b2 = 0.05 * jax.random.normal(k_b2, (C,), dtype=jnp.float32)

    # Non-trivial eval-mode BatchNorm2d(C//2) stats to exercise the fold.
    bn_gamma = 1.0 + 0.1 * jax.random.normal(k_g, (Ch,), dtype=jnp.float32)
    bn_beta = 0.1 * jax.random.normal(k_b, (Ch,), dtype=jnp.float32)
    bn_mean = 0.1 * jax.random.normal(k_m, (Ch,), dtype=jnp.float32)
    bn_var = 0.5 + jnp.abs(jax.random.normal(k_v, (Ch,), dtype=jnp.float32))

    ref = _reference(feat, w1, bn_gamma, bn_beta, bn_mean, bn_var, w2, b2)

    # f32 path
    out = feature_att(feat, w1, bn_gamma, bn_beta, bn_mean, bn_var, w2, b2)
    out = jax.block_until_ready(out)
    assert out.shape == (N, C, H, W)
    assert jnp.allclose(out.astype(jnp.float32), ref, atol=2e-5, rtol=1e-4), \
        "f32 mismatch vs reference"

    # bf16 path (gate multiply runs in bf16; loose tolerance vs the f32 reference).
    out_bf16 = feature_att(feat.astype(jnp.bfloat16), w1, bn_gamma, bn_beta,
                           bn_mean, bn_var, w2, b2)
    out_bf16 = jax.block_until_ready(out_bf16)
    assert out_bf16.dtype == jnp.bfloat16
    assert jnp.allclose(out_bf16.astype(jnp.float32), ref, atol=1e-1, rtol=1e-1), \
        "bf16 mismatch vs reference"

    print("KERNEL_OK")
</pallas_src>

<mosaic_0001>
module attributes {stable_mosaic.version = 11 : i64} {
  func.func @_feature_att_kernel(%arg0: i32, %arg1: i32, %arg2: memref<1x16x256xf32, #tpu.memory_space<vmem>>, %arg3: memref<8x16xf32, #tpu.memory_space<vmem>>, %arg4: memref<8x1xf32, #tpu.memory_space<vmem>>, %arg5: memref<16x8xf32, #tpu.memory_space<vmem>>, %arg6: memref<16x1xf32, #tpu.memory_space<vmem>>, %arg7: memref<1x16x256xf32, #tpu.memory_space<vmem>>) attributes {dimension_semantics = [#tpu.dimension_semantics<parallel>, #tpu.dimension_semantics<parallel>], iteration_bounds = array<i64: 2, 1>, scalar_prefetch = 0 : i64, scratch_operands = 0 : i64, tpu.core_type = #tpu.core_type<tc>, window_params = [{transform_indices = @transform_0, window_bounds = array<i64: 1, 16, 256>}, {pipeline_mode = #tpu.pipeline_mode<synchronous>, transform_indices = @transform_1, window_bounds = array<i64: 8, 16>}, {pipeline_mode = #tpu.pipeline_mode<synchronous>, transform_indices = @transform_2, window_bounds = array<i64: 8, 1>}, {pipeline_mode = #tpu.pipeline_mode<synchronous>, transform_indices = @transform_3, window_bounds = array<i64: 16, 8>}, {pipeline_mode = #tpu.pipeline_mode<synchronous>, transform_indices = @transform_4, window_bounds = array<i64: 16, 1>}, {transform_indices = @transform_5, window_bounds = array<i64: 1, 16, 256>}]} {
    %c0 = arith.constant 0 : index
    %c0_0 = arith.constant 0 : index
    %c0_1 = arith.constant 0 : index
    %0 = vector.load %arg2[%c0, %c0_0, %c0_1] : memref<1x16x256xf32, #tpu.memory_space<vmem>>, vector<1x16x256xf32>
    %1 = vector.shape_cast %0 : vector<1x16x256xf32> to vector<16x256xf32>
    %c0_2 = arith.constant 0 : index
    %c0_3 = arith.constant 0 : index
    %2 = vector.load %arg3[%c0_2, %c0_3] : memref<8x16xf32, #tpu.memory_space<vmem>>, vector<8x16xf32>
    %cst = arith.constant dense<0.000000e+00> : vector<8x256xf32>
    %3 = tpu.matmul %2, %1, %cst {dimension_numbers = #tpu.dot_dimension_numbers<[1], [0], [0], [1], [0, 0, 1, 1], [], []>} : vector<8x16xf32>, vector<16x256xf32>, vector<8x256xf32> -> vector<8x256xf32>
    %c0_4 = arith.constant 0 : index
    %c0_5 = arith.constant 0 : index
    %4 = vector.load %arg4[%c0_4, %c0_5] : memref<8x1xf32, #tpu.memory_space<vmem>>, vector<8x1xf32>
    %5 = vector.broadcast %4 : vector<8x1xf32> to vector<8x256xf32>
    %6 = arith.addf %3, %5 : vector<8x256xf32>
    %cst_6 = arith.constant 0.000000e+00 : f32
    %7 = vector.broadcast %cst_6 : f32 to vector<8x256xf32>
    %8 = arith.maximumf %6, %7 : vector<8x256xf32>
    %c0_7 = arith.constant 0 : index
    %c0_8 = arith.constant 0 : index
    %9 = vector.load %arg5[%c0_7, %c0_8] : memref<16x8xf32, #tpu.memory_space<vmem>>, vector<16x8xf32>
    %cst_9 = arith.constant dense<0.000000e+00> : vector<16x256xf32>
    %10 = tpu.matmul %9, %8, %cst_9 {dimension_numbers = #tpu.dot_dimension_numbers<[1], [0], [0], [1], [0, 0, 1, 1], [], []>} : vector<16x8xf32>, vector<8x256xf32>, vector<16x256xf32> -> vector<16x256xf32>
    %c0_10 = arith.constant 0 : index
    %c0_11 = arith.constant 0 : index
    %11 = vector.load %arg6[%c0_10, %c0_11] : memref<16x1xf32, #tpu.memory_space<vmem>>, vector<16x1xf32>
    %12 = vector.broadcast %11 : vector<16x1xf32> to vector<16x256xf32>
    %13 = arith.addf %10, %12 : vector<16x256xf32>
    %14 = arith.negf %13 : vector<16x256xf32>
    %15 = math.exp %14 : vector<16x256xf32>
    %cst_12 = arith.constant 1.000000e+00 : f32
    %16 = vector.broadcast %cst_12 : f32 to vector<16x256xf32>
    %17 = arith.addf %16, %15 : vector<16x256xf32>
    %18 = arith.divf %16, %17 : vector<16x256xf32>
    %19 = arith.mulf %18, %1 : vector<16x256xf32>
    %c0_13 = arith.constant 0 : index
    %c0_14 = arith.constant 0 : index
    %c0_15 = arith.constant 0 : index
    %20 = vector.load %arg7[%c0_13, %c0_14, %c0_15] : memref<1x16x256xf32, #tpu.memory_space<vmem>>, vector<1x16x256xf32>
    %21 = vector.shape_cast %20 : vector<1x16x256xf32> to vector<16x256xf32>
    %22 = vector.shape_cast %19 : vector<16x256xf32> to vector<1x16x256xf32>
    tpu.vector_store %arg7[%c0_13, %c0_14, %c0_15], %22 {strides = array<i32>} : memref<1x16x256xf32, #tpu.memory_space<vmem>>, vector<1x16x256xf32>,
    return
  }
  func.func @transform_0(%arg0: i32, %arg1: i32) -> (i32, i32, i32) {
    %c0_i32 = arith.constant 0 : i32
    %c0_i32_0 = arith.constant 0 : i32
    return %arg0, %c0_i32, %arg1 : i32, i32, i32
  }
  func.func @transform_1(%arg0: i32, %arg1: i32) -> (i32, i32) {
    %c0_i32 = arith.constant 0 : i32
    %c0_i32_0 = arith.constant 0 : i32
    %c0_i32_1 = arith.constant 0 : i32
    return %c0_i32, %c0_i32_0 : i32, i32
  }
  func.func @transform_2(%arg0: i32, %arg1: i32) -> (i32, i32) {
    %c0_i32 = arith.constant 0 : i32
    %c0_i32_0 = arith.constant 0 : i32
    %c0_i32_1 = arith.constant 0 : i32
    return %c0_i32, %c0_i32_0 : i32, i32
  }
  func.func @transform_3(%arg0: i32, %arg1: i32) -> (i32, i32) {
    %c0_i32 = arith.constant 0 : i32
    %c0_i32_0 = arith.constant 0 : i32
    %c0_i32_1 = arith.constant 0 : i32
    return %c0_i32, %c0_i32_0 : i32, i32
  }
  func.func @transform_4(%arg0: i32, %arg1: i32) -> (i32, i32) {
    %c0_i32 = arith.constant 0 : i32
    %c0_i32_0 = arith.constant 0 : i32
    %c0_i32_1 = arith.constant 0 : i32
    return %c0_i32, %c0_i32_0 : i32, i32
  }
  func.func @transform_5(%arg0: i32, %arg1: i32) -> (i32, i32, i32) {
    %c0_i32 = arith.constant 0 : i32
    %c0_i32_0 = arith.constant 0 : i32
    return %arg0, %c0_i32, %arg1 : i32, i32, i32
  }
}

</mosaic_0001>

<bundles_post_ra>
// kernel: feature_att.1
= control target key start
LH: loop header
LB: loop body
LE: loop exit
PB: predicated region body
PF: predicated region fallthrough
CT: control target
= control target key end

     0   :  { %s693_s18 = smov 0   ;;  %s695_s19 = smov 0   ;;  %s763_s0 = inlined_call_operand.vmem [shape: f32[2,16,256], index: 0, kind: input, shape index: {}]   ;;  %s764_s1 = inlined_call_operand.vmem [shape: f32[8,16], index: 1, kind: input, shape index: {}]   ;;  %s765_s2 = inlined_call_operand.vmem [shape: f32[8,1], index: 2, kind: input, shape index: {}]   ;;  %s766_s3 = inlined_call_operand.vmem [shape: f32[16,8], index: 3, kind: input, shape index: {}]   ;;  %s767_s4 = inlined_call_operand.vmem [shape: f32[16,1], index: 4, kind: input, shape index: {}]   ;;  %s768_s5 = inlined_call_operand.vmem [shape: f32[2,16,256], index: 5, kind: output, shape index: {}]  }
   0x1   :  { %s697_s20 = smov 0  }
   0x2 LB: > { %s27_s21 = sadd.s32 1, %s655_s19  ;;  %p573_p0 = scmp.ge.s32.totalorder %s659_s20, 1  ;;  %s659_s20 = sphi %s697_s20, %s15_s20   ;;  %s655_s19 = sphi %s695_s19, %s770_s19   ;;  %s651_s18 = sphi %s693_s18, %s769_s18  }
   0x3   : > { %p29_p1 = scmp.ge.s32.totalorder %s27_s21, 2  ;;  %p208_p2 = scmp.lt.s32.totalorder %s659_s20, 3 }
   0x5   : > { %s772_s21 = smov (%p29_p1, %s27_s21), 0  ;;  %p209_p3 = pnand %p573_p0, %p208_p2 }
   0x6   : > { %p245_p4 = scmp.lt.s32.totalorder (!%p209_p3), %s651_s18, 1  ;;  %v269_v0 = vld [vmem:[%s765_s2] sm:$0xff] (!%p209_p3)  ;;  %v661_v1 = vmov (!%p209_p3), 0.0   ;;  %v662_v2 = vmov (!%p209_p3), 0   ;;  %vm275_vm0 = vcmask (!%p209_p3), 130048   ;;  %v355_v11 = vld [vmem:[%s767_s4 + $0x8] sm:$0xff] (!%p209_p3) }
   0x7   : > { %212 = sbr.rel (%p209_p3) target bundleno = 491 (0x1eb), region = 40  ;;  %343 = vmatprep.mubr.f32.mxu0 (!%p209_p3), %v661_v1  ;;  %619 = vset.pattern.permute.xlu0 (!%p209_p3), %v662_v2  ;;  %v354_v3 = vld [vmem:[%s767_s4] sm:$0xff] (!%p209_p3)  ;;  %vm366_vm1 = vcmask (!%p209_p3), 64512   ;;  %v353_v20 = vld [vmem:[%s766_s3 + $0x8] sm:$0xff] (!%p209_p3) }
   0x8   : > { %272 = vperm.xlu0 (!%p209_p3), %619, %v269_v0   ;;  %437 = vmatprep.mubr.f32.mxu1 (!%p209_p3), %v661_v1  ;;  %v268_v10 = vld [vmem:[%s764_s1] sm:$0xff] (!%p209_p3) }
   0x9   : > { %620 = vset.pattern.permute.xlu1 (!%p209_p3), %v662_v2  ;;  %v352_v19 = vld [vmem:[%s766_s3] sm:$0xff] (!%p209_p3) }
   0xa   : > { %363 = vperm.xlu1 (!%p209_p3), %620, %v355_v11  }
   0xc   : > { %358 = vperm.xlu0 (!%p209_p3), %619, %v354_v3  }
   0xe   : > { %s774_s18 = smov (!%p245_p4, %s651_s18), 1 }
   0xf   : > { %s587_s26 = sshll.u32 %s774_s18, 5 }
  0x10   : > { %s252_s29 = scalar_lea.vmem %s763_s0, %s587_s26  ;;  %s262_s15 = scalar_lea.vmem %s768_s5, %s587_s26 }
  0x11   : > { %v725_v4 = vld [vmem:[%s252_s29 + $0x8] sm:$0xff]  ;;  %v727_v5 = vld [vmem:[%s252_s29 + $0x18] sm:$0xff]  ;;  %v264_v6 = vld [vmem:[%s252_s29] sm:$0xff] }
  0x12   : > { %v589_v7 = vpack.c.bf16 %v727_v5, %v725_v4  ;;  %v731_v8 = vld [vmem:[%s252_s29 + $0x10] sm:$0xff] }
  0x13   : > { %v591_v9 = vpack.c.bf16 %v731_v8, %v264_v6 }
  0x14   : > { %590 = vmatprep.subr.bf16.mxu0 %v589_v7 }
  0x15   : > { %592 = vmatpush1.bf16.msra.mxu0 %v591_v9 }
  0x18   : > { %578 = vmatmul.mubr.msk.f32.vlgmr.msra.gmra.mrb[0].mxu0 %vm275_vm0, %v268_v10 }
  0x87   : > { %v273_v12 = vpop.permute.xlu0 %272 }
  0x89   : > { %v364_v26 = vpop.permute.xlu1 %363 }
  0x8b   : > { %v359_v21 = vpop.permute.xlu0 %358 }
  0xeb   : > { %v345_v13 = vpop.f32.mrb[0].mxu0 }
  0xec   : > { %v346_v14 = vadd.f32 %v345_v13, %v273_v12  ;;  %v347_v15 = vpop.f32.mrb[1].mxu0 }
  0xed   : > { %v348_v16 = vadd.f32 %v347_v15, %v273_v12 }
  0xee   : > { %v350_v18 = vmax.f32 %v346_v14, 0.0 }
  0xef   : > { %v351_v17 = vmax.f32 %v348_v16, 0.0 }
  0xf1   : > { %373 = vmatprep.subr.mxu1 %v351_v17 }
  0xf2   : > { %374 = vmatpush1.msra.mxu1 %v350_v18 }
  0xf3   : > { %579 = vmatmul.mubr.msk.f32.vlgmr.msra.gmra.mrb[0].mxu1 %vm366_vm1, %v352_v19 }
  0xf4   : > { %443 = vmatprep.mubr.f32.mxu1 %v661_v1 }
  0xf7   : > { %580 = vmatmul.mubr.msk.f32.gmra.mrb[2].mxu1 %vm366_vm1, %v353_v20 }
 0x1c6   : > { %v439_v22 = vpop.f32.mrb[0].mxu1 }
 0x1c7   : > { %v440_v23 = vadd.f32 %v439_v22, %v359_v21  ;;  %v441_v24 = vpop.f32.mrb[1].mxu1 }
 0x1c8   : > { %v442_v25 = vadd.f32 %v441_v24, %v359_v21 }
 0x1c9   : > { %v581_v27 = vmul.f32 -1.442695, %v440_v23 }
 0x1ca   : > { %v582_v28 = vmul.f32 -1.442695, %v442_v25  ;;  %v445_v29 = vpop.f32.mrb[2].mxu1 }
 0x1cb   : > { %621 = vpow2.f32 %v581_v27  ;;  %v446_v30 = vadd.f32 %v445_v29, %v364_v26  ;;  %v447_v31 = vpop.f32.mrb[3].mxu1 }
 0x1cc   : > { %623 = vpow2.f32 %v582_v28  ;;  %v448_v32 = vadd.f32 %v447_v31, %v364_v26 }
 0x1cd   : > { %v583_v33 = vmul.f32 -1.442695, %v446_v30 }
 0x1ce   : > { %v584_v34 = vmul.f32 -1.442695, %v448_v32 }
 0x1cf   : > { %625 = vpow2.f32 %v583_v33 }
 0x1d0   : > { %627 = vpow2.f32 %v584_v34 }
 0x1d5   : > { %v622_v35 = vpop.eup %621 }
 0x1d6   : > { %v624_v36 = vpop.eup %623  ;;  %v462_v37 = vadd.f32 1.0, %v622_v35 }
 0x1d7   : > { %v463_v38 = vadd.f32 1.0, %v624_v36 }
 0x1d8   : > { %629 = vrcp.f32 %v462_v37 }
 0x1d9   : > { %v626_v39 = vpop.eup %625  ;;  %631 = vrcp.f32 %v463_v38 }
 0x1da   : > { %v628_v40 = vpop.eup %627  ;;  %v464_v41 = vadd.f32 1.0, %v626_v39 }
 0x1db   : > { %v465_v42 = vadd.f32 1.0, %v628_v40 }
 0x1dc   : > { %633 = vrcp.f32 %v464_v41 }
 0x1dd   : > { %635 = vrcp.f32 %v465_v42 }
 0x1e2   : > { %v630_v43 = vpop.eup %629 }
 0x1e3   : > { %v632_v44 = vpop.eup %631  ;;  %v474_v45 = vmul.f32 %v630_v43, %v264_v6 }
 0x1e4   : > { %v475_v46 = vmul.f32 %v632_v44, %v725_v4 }
 0x1e5   : > { %478 = vst [vmem:[%s262_s15] sm:$0xff] %v474_v45 }
 0x1e6   : > { %v634_v47 = vpop.eup %633  ;;  %479 = vst [vmem:[%s262_s15 + $0x8] sm:$0xff] %v475_v46 }
 0x1e7   : > { %v636_v48 = vpop.eup %635  ;;  %v476_v49 = vmul.f32 %v634_v47, %v731_v8 }
 0x1e8   : > { %v477_v50 = vmul.f32 %v636_v48, %v727_v5 }
 0x1e9   : > { %480 = vst [vmem:[%s262_s15 + $0x10] sm:$0xff] %v476_v49 }
 0x1ea   : > { %481 = vst [vmem:[%s262_s15 + $0x18] sm:$0xff] %v477_v50 }
 0x1eb PF: > { %s15_s20 = sadd.s32 1, %s659_s20   ;;  %s769_s18 = smov %s655_s19 }
 0x1ec   : > { %p12_p5 = scmp.ge.s32.totalorder %s15_s20, 4   ;;  %s770_s19 = smov %s772_s21 }
 0x1ee   :  { %14 = sbr.rel (!%p12_p5) target bundleno = 2 (0x2), region = 70 }

</bundles_post_ra>
